<compile_context>
chip_gen: v7x
topology: tpu7x:2x2x1
jax: 0.10.0
libtpu: 0.0.40
codegen_flags: <defaults>
</compile_context>

<pallas_src>
import functools

import jax
import jax.numpy as jnp
from jax.experimental import pallas as pl
from jax.experimental.pallas import tpu as pltpu

VOCAB = 64        # stands in for len(ws)
MAX_LEN = 8
EMB_DIM = 100
NUM_CLASSES = 2
LANE = 128
SUBLANE = 8


def _round_up(x, m):
    return (x + m - 1) // m * m


def imdb_kernel(ids_ref, emb_ref, w_ref, b_ref, out_ref, xflat_ref, *,
                batch_p, seq_len, num_classes):
    """ids_ref   : [L*Bp, 1] int32, row (l*Bp + b) holds ids[b, l]
       emb_ref   : [Vp, Dp]  f32, zero-padded embedding table
       w_ref     : [L*Dp, Cp] f32, zero-padded fc1.weight.T in x.view order
       b_ref     : [1, Cp]   f32, zero-padded fc1.bias
       out_ref   : [Bp, Cp]  f32, log_softmax in columns [0, num_classes)
       xflat_ref : [Bp, L*Dp] f32 VMEM scratch (flattened embeddings)"""
    Vp = emb_ref.shape[0]
    Dp = emb_ref.shape[1]
    Cp = out_ref.shape[1]
    LB = ids_ref.shape[0]

    # --- embedding lookup for ALL tokens as one one-hot @ table MXU matmul ---
    lane = jax.lax.broadcasted_iota(jnp.int32, (LB, Vp), 1)        # built once
    onehot = (ids_ref[...] == lane).astype(jnp.float32)            # [L*Bp, Vp]
    x = jnp.dot(onehot, emb_ref[...],
                preferred_element_type=jnp.float32)                # [L*Bp, Dp]

    # --- row-major flatten matching x.view(-1, L*D):
    #     xflat[b, l*Dp:(l+1)*Dp] = x[l*Bp + b]   (all slices (8,128)-aligned)
    for l in range(seq_len):
        xflat_ref[:, l * Dp:(l + 1) * Dp] = x[l * batch_p:(l + 1) * batch_p, :]

    # --- fc1 as ONE lane-dense MXU matmul + bias ---
    logits = jnp.dot(xflat_ref[...], w_ref[...],
                     preferred_element_type=jnp.float32) + b_ref[...]   # [Bp, Cp]

    # --- masked, numerically stable log_softmax over the real class columns ---
    cls = jax.lax.broadcasted_iota(jnp.int32, (batch_p, Cp), 1)
    valid = cls < num_classes
    logits = jnp.where(valid, logits, jnp.float32(-1e30))
    m = jnp.max(logits, axis=-1, keepdims=True)
    lse = jnp.log(jnp.sum(jnp.exp(logits - m), axis=-1, keepdims=True)) + m
    out_ref[...] = jnp.where(valid, logits - lse, 0.0)


def imdb_forward(ids, emb, fc1_weight, fc1_bias):
    """ids: [B, L] int32; emb: [V, D] f32; fc1_weight: [C, L*D]; fc1_bias: [C]."""
    B, L = ids.shape
    V, D = emb.shape
    C = fc1_weight.shape[0]

    Bp = _round_up(B, SUBLANE)
    Vp = _round_up(V, LANE)
    Dp = _round_up(D, LANE)
    Cp = _round_up(C, LANE)

    # Layout plumbing in the wrapper (weights are static, padding is exact).
    emb_p = jnp.zeros((Vp, Dp), jnp.float32).at[:V, :D].set(emb)
    w3 = fc1_weight.T.reshape(L, D, C)                 # matches x.view row-major order
    w_p = (jnp.zeros((L, Dp, Cp), jnp.float32).at[:, :D, :C].set(w3)
           .reshape(L * Dp, Cp))                       # lane-dense fc RHS
    b_p = jnp.zeros((1, Cp), jnp.float32).at[0, :C].set(fc1_bias)
    # (l, b)-major token order so each position's rows form a contiguous,
    # sublane-aligned slice in the gathered embedding matrix.
    ids_pad = jnp.zeros((Bp, L), jnp.int32).at[:B].set(ids.astype(jnp.int32))
    ids_lb = ids_pad.T.reshape(L * Bp, 1)

    kernel = functools.partial(imdb_kernel, batch_p=Bp, seq_len=L, num_classes=C)
    out_p = pl.pallas_call(
        kernel,
        out_shape=jax.ShapeDtypeStruct((Bp, Cp), jnp.float32),
        in_specs=[
            pl.BlockSpec(memory_space=pltpu.MemorySpace.VMEM),  # ids (l,b)-major
            pl.BlockSpec(memory_space=pltpu.MemorySpace.VMEM),  # padded embedding
            pl.BlockSpec(memory_space=pltpu.MemorySpace.VMEM),  # padded fc1 weight
            pl.BlockSpec(memory_space=pltpu.MemorySpace.VMEM),  # padded fc1 bias
        ],
        out_specs=pl.BlockSpec(memory_space=pltpu.MemorySpace.VMEM),
        scratch_shapes=[pltpu.VMEM((Bp, L * Dp), jnp.float32)],
    )(ids_lb, emb_p, w_p, b_p)
    return out_p[:B, :C]


def reference_forward(ids, emb, fc1_weight, fc1_bias):
    # Plain-JAX reference mirroring the PyTorch module.
    x = emb[ids]                                      # nn.Embedding
    x = x.reshape(ids.shape[0], MAX_LEN * EMB_DIM)    # x.view(-1, MAX_LEN*100)
    logits = x @ fc1_weight.T + fc1_bias              # fc1
    return jax.nn.log_softmax(logits, axis=1)         # F.log_softmax (dim=1 for 2D)


if __name__ == "__main__":
    key = jax.random.PRNGKey(0)
    k_ids, k_emb, k_w, k_b = jax.random.split(key, 4)

    B = 2
    ids = jax.random.randint(k_ids, (B, MAX_LEN), 0, VOCAB, dtype=jnp.int32)

    # nn.Embedding default init: N(0, 1)
    emb = jax.random.normal(k_emb, (VOCAB, EMB_DIM), dtype=jnp.float32)

    # nn.Linear default init: U(-1/sqrt(fan_in), 1/sqrt(fan_in))
    fan_in = MAX_LEN * EMB_DIM
    bound = 1.0 / (fan_in ** 0.5)
    fc1_weight = jax.random.uniform(k_w, (NUM_CLASSES, fan_in),
                                    minval=-bound, maxval=bound, dtype=jnp.float32)
    fc1_bias = jax.random.uniform(k_b, (NUM_CLASSES,),
                                  minval=-bound, maxval=bound, dtype=jnp.float32)

    out = imdb_forward(ids, emb, fc1_weight, fc1_bias)
    out = jax.block_until_ready(out)

    ref = reference_forward(ids, emb, fc1_weight, fc1_bias)
    assert out.shape == (B, NUM_CLASSES)
    assert jnp.allclose(out, ref, atol=2e-3, rtol=2e-3), (out, ref)

    print("KERNEL_OK")
</pallas_src>

<mosaic_0001>
module attributes {stable_mosaic.version = 11 : i64} {
  func.func @imdb_kernel(%arg0: memref<64x1xi32, #tpu.memory_space<vmem>>, %arg1: memref<128x128xf32, #tpu.memory_space<vmem>>, %arg2: memref<1024x128xf32, #tpu.memory_space<vmem>>, %arg3: memref<1x128xf32, #tpu.memory_space<vmem>>, %arg4: memref<8x128xf32, #tpu.memory_space<vmem>>, %arg5: memref<8x1024xf32, #tpu.memory_space<vmem>>) attributes {dimension_semantics = [], scalar_prefetch = 0 : i64, scratch_operands = 1 : i64, tpu.core_type = #tpu.core_type<tc>} {
    %0 = tpu.iota {dimensions = array<i32: 1>} : vector<64x128xi32>
    %c0 = arith.constant 0 : index
    %c0_0 = arith.constant 0 : index
    %1 = vector.load %arg0[%c0, %c0_0] : memref<64x1xi32, #tpu.memory_space<vmem>>, vector<64x1xi32>
    %2 = vector.broadcast %1 : vector<64x1xi32> to vector<64x128xi32>
    %3 = arith.cmpi eq, %2, %0 : vector<64x128xi32>
    %4 = arith.extui %3 : vector<64x128xi1> to vector<64x128xi32>
    %5 = arith.sitofp %4 : vector<64x128xi32> to vector<64x128xf32>
    %c0_1 = arith.constant 0 : index
    %c0_2 = arith.constant 0 : index
    %6 = vector.load %arg1[%c0_1, %c0_2] : memref<128x128xf32, #tpu.memory_space<vmem>>, vector<128x128xf32>
    %cst = arith.constant dense<0.000000e+00> : vector<64x128xf32>
    %7 = tpu.matmul %5, %6, %cst {dimension_numbers = #tpu.dot_dimension_numbers<[1], [0], [0], [1], [0, 0, 1, 1], [], []>} : vector<64x128xf32>, vector<128x128xf32>, vector<64x128xf32> -> vector<64x128xf32>
    %8 = vector.extract_strided_slice %7 {offsets = [0, 0], sizes = [8, 128], strides = [1, 1]} : vector<64x128xf32> to vector<8x128xf32>
    %c0_3 = arith.constant 0 : index
    %c0_4 = arith.constant 0 : index
    %9 = vector.load %arg5[%c0_3, %c0_4] : memref<8x1024xf32, #tpu.memory_space<vmem>>, vector<8x128xf32>
    tpu.vector_store %arg5[%c0_3, %c0_4], %8 {strides = array<i32>} : memref<8x1024xf32, #tpu.memory_space<vmem>>, vector<8x128xf32>,
    %10 = vector.extract_strided_slice %7 {offsets = [8, 0], sizes = [8, 128], strides = [1, 1]} : vector<64x128xf32> to vector<8x128xf32>
    %c0_5 = arith.constant 0 : index
    %c128 = arith.constant 128 : index
    %11 = vector.load %arg5[%c0_5, %c128] : memref<8x1024xf32, #tpu.memory_space<vmem>>, vector<8x128xf32>
    tpu.vector_store %arg5[%c0_5, %c128], %10 {strides = array<i32>} : memref<8x1024xf32, #tpu.memory_space<vmem>>, vector<8x128xf32>,
    %12 = vector.extract_strided_slice %7 {offsets = [16, 0], sizes = [8, 128], strides = [1, 1]} : vector<64x128xf32> to vector<8x128xf32>
    %c0_6 = arith.constant 0 : index
    %c256 = arith.constant 256 : index
    %13 = vector.load %arg5[%c0_6, %c256] : memref<8x1024xf32, #tpu.memory_space<vmem>>, vector<8x128xf32>
    tpu.vector_store %arg5[%c0_6, %c256], %12 {strides = array<i32>} : memref<8x1024xf32, #tpu.memory_space<vmem>>, vector<8x128xf32>,
    %14 = vector.extract_strided_slice %7 {offsets = [24, 0], sizes = [8, 128], strides = [1, 1]} : vector<64x128xf32> to vector<8x128xf32>
    %c0_7 = arith.constant 0 : index
    %c384 = arith.constant 384 : index
    %15 = vector.load %arg5[%c0_7, %c384] : memref<8x1024xf32, #tpu.memory_space<vmem>>, vector<8x128xf32>
    tpu.vector_store %arg5[%c0_7, %c384], %14 {strides = array<i32>} : memref<8x1024xf32, #tpu.memory_space<vmem>>, vector<8x128xf32>,
    %16 = vector.extract_strided_slice %7 {offsets = [32, 0], sizes = [8, 128], strides = [1, 1]} : vector<64x128xf32> to vector<8x128xf32>
    %c0_8 = arith.constant 0 : index
    %c512 = arith.constant 512 : index
    %17 = vector.load %arg5[%c0_8, %c512] : memref<8x1024xf32, #tpu.memory_space<vmem>>, vector<8x128xf32>
    tpu.vector_store %arg5[%c0_8, %c512], %16 {strides = array<i32>} : memref<8x1024xf32, #tpu.memory_space<vmem>>, vector<8x128xf32>,
    %18 = vector.extract_strided_slice %7 {offsets = [40, 0], sizes = [8, 128], strides = [1, 1]} : vector<64x128xf32> to vector<8x128xf32>
    %c0_9 = arith.constant 0 : index
    %c640 = arith.constant 640 : index
    %19 = vector.load %arg5[%c0_9, %c640] : memref<8x1024xf32, #tpu.memory_space<vmem>>, vector<8x128xf32>
    tpu.vector_store %arg5[%c0_9, %c640], %18 {strides = array<i32>} : memref<8x1024xf32, #tpu.memory_space<vmem>>, vector<8x128xf32>,
    %20 = vector.extract_strided_slice %7 {offsets = [48, 0], sizes = [8, 128], strides = [1, 1]} : vector<64x128xf32> to vector<8x128xf32>
    %c0_10 = arith.constant 0 : index
    %c768 = arith.constant 768 : index
    %21 = vector.load %arg5[%c0_10, %c768] : memref<8x1024xf32, #tpu.memory_space<vmem>>, vector<8x128xf32>
    tpu.vector_store %arg5[%c0_10, %c768], %20 {strides = array<i32>} : memref<8x1024xf32, #tpu.memory_space<vmem>>, vector<8x128xf32>,
    %22 = vector.extract_strided_slice %7 {offsets = [56, 0], sizes = [8, 128], strides = [1, 1]} : vector<64x128xf32> to vector<8x128xf32>
    %c0_11 = arith.constant 0 : index
    %c896 = arith.constant 896 : index
    %23 = vector.load %arg5[%c0_11, %c896] : memref<8x1024xf32, #tpu.memory_space<vmem>>, vector<8x128xf32>
    tpu.vector_store %arg5[%c0_11, %c896], %22 {strides = array<i32>} : memref<8x1024xf32, #tpu.memory_space<vmem>>, vector<8x128xf32>,
    %c0_12 = arith.constant 0 : index
    %c0_13 = arith.constant 0 : index
    %24 = vector.load %arg5[%c0_12, %c0_13] : memref<8x1024xf32, #tpu.memory_space<vmem>>, vector<8x1024xf32>
    %c0_14 = arith.constant 0 : index
    %c0_15 = arith.constant 0 : index
    %25 = vector.load %arg2[%c0_14, %c0_15] : memref<1024x128xf32, #tpu.memory_space<vmem>>, vector<1024x128xf32>
    %cst_16 = arith.constant dense<0.000000e+00> : vector<8x128xf32>
    %26 = tpu.matmul %24, %25, %cst_16 {dimension_numbers = #tpu.dot_dimension_numbers<[1], [0], [0], [1], [0, 0, 1, 1], [], []>} : vector<8x1024xf32>, vector<1024x128xf32>, vector<8x128xf32> -> vector<8x128xf32>
    %c0_17 = arith.constant 0 : index
    %c0_18 = arith.constant 0 : index
    %27 = vector.load %arg3[%c0_17, %c0_18] : memref<1x128xf32, #tpu.memory_space<vmem>>, vector<1x128xf32>
    %28 = vector.broadcast %27 : vector<1x128xf32> to vector<8x128xf32>
    %29 = arith.addf %26, %28 : vector<8x128xf32>
    %30 = tpu.iota {dimensions = array<i32: 1>} : vector<8x128xi32>
    %c2_i32 = arith.constant 2 : i32
    %31 = vector.broadcast %c2_i32 : i32 to vector<8x128xi32>
    %32 = arith.cmpi slt, %30, %31 : vector<8x128xi32>
    %cst_19 = arith.constant -1.000000e+30 : f32
    %33 = vector.broadcast %cst_19 : f32 to vector<8x128xf32>
    %34 = arith.select %32, %29, %33 : vector<8x128xi1>, vector<8x128xf32>
    %cst_20 = arith.constant dense<0xFF800000> : vector<8xf32>
    %35 = vector.multi_reduction <maximumf>, %34, %cst_20 [1] : vector<8x128xf32> to vector<8xf32>
    %36 = vector.shape_cast %35 : vector<8xf32> to vector<8x1xf32>
    %37 = vector.broadcast %36 : vector<8x1xf32> to vector<8x128xf32>
    %38 = arith.subf %34, %37 : vector<8x128xf32>
    %39 = math.exp %38 : vector<8x128xf32>
    %cst_21 = arith.constant dense<0.000000e+00> : vector<8xf32>
    %40 = vector.multi_reduction <add>, %39, %cst_21 [1] : vector<8x128xf32> to vector<8xf32>
    %41 = vector.shape_cast %40 : vector<8xf32> to vector<8x1xf32>
    %42 = math.log %41 : vector<8x1xf32>
    %43 = arith.addf %42, %36 : vector<8x1xf32>
    %44 = vector.broadcast %43 : vector<8x1xf32> to vector<8x128xf32>
    %45 = arith.subf %34, %44 : vector<8x128xf32>
    %cst_22 = arith.constant 0.000000e+00 : f32
    %46 = vector.broadcast %cst_22 : f32 to vector<8x128xf32>
    %47 = arith.select %32, %45, %46 : vector<8x128xi1>, vector<8x128xf32>
    %c0_23 = arith.constant 0 : index
    %c0_24 = arith.constant 0 : index
    %48 = vector.load %arg4[%c0_23, %c0_24] : memref<8x128xf32, #tpu.memory_space<vmem>>, vector<8x128xf32>
    tpu.vector_store %arg4[%c0_23, %c0_24], %47 {strides = array<i32>} : memref<8x128xf32, #tpu.memory_space<vmem>>, vector<8x128xf32>,
    return
  }
}

</mosaic_0001>

<bundles_post_ra>
// kernel: tpu_custom_call.1
= control target key start
LH: loop header
LB: loop body
LE: loop exit
PB: predicated region body
PF: predicated region fallthrough
CT: control target
= control target key end

     0   :  { %9 = vsyncpa [#allocation4], 0  ;;  %s1273_s0 = inlined_call_operand.vmem [shape: s32[64,1], index: 0, kind: input, shape index: {}]   ;;  %s1274_s1 = inlined_call_operand.hbm [shape: f32[128,128], index: 1, kind: input, shape index: {}]   ;;  %s1275_s2 = inlined_call_operand.hbm [shape: f32[1024,128], index: 2, kind: input, shape index: {}]   ;;  %s1276_s3 = inlined_call_operand.vmem [shape: f32[1,128], index: 3, kind: input, shape index: {}]   ;;  %s1277_s4 = inlined_call_operand.hbm [shape: f32[8,128], index: 4, kind: output, shape index: {}]  }
   0x1   :  { %10 = vsyncpa [#allocation7], 0 }
   0x2   :  { %11 = vsyncpa [#allocation5], 0  ;;  %s1157_s15 = smov [#allocation3]   ;;  %s1085_s19 = scalar_lea.hbm %s1274_s1, 2048 }
   0x3   :  { %s19_s16 = sshll.u32 %s1157_s15, 4  ;;  %p1086_p0 = scmp.ne.s32.totalorder %s1274_s1, %s1085_s19  ;;  %s20_s16 = int_to_ptr.vmem [resolvable:$true] %s19_s16 }
   0x4   :  { %p1089_p1 = scmp.lt.u32.totalorder %s1085_s19, %s1274_s1 }
   0x6   :  { %p1091_p2 = pnand %p1089_p1, %p1086_p0 }
   0x8   :  { %1094 = shalt.err (!%p1091_p2)
}
   0x9   :  { %s1095_s24 = scalar_lea.vmem %s20_s16, 2048  ;;  %p1100_p4 = scmp.lt.s32.totalorder %s20_s16, %s20_s16 }
   0xa   :  { %p1096_p3 = scmp.ne.s32.totalorder %s20_s16, %s1095_s24  ;;  %p1101_p5 = scmp.lt.s32.totalorder %s1095_s24, %s1095_s24 }
   0xc   :  { %p1102_p6 = por %p1101_p5, %p1100_p4 }
   0xe   :  { %p1103_p7 = pnand %p1102_p6, %p1096_p3 }
  0x10   :  { %1106 = shalt.err (!%p1103_p7)
}
  0x11   :  { %s1158_s25 = smov 128   ;;  %s1159_s26 = smov 8  }
  0x12   :  { %25 = dma.hbm_to_vmem [thread:$0]  %s1274_s1, 2048, %s20_s16, [#allocation4], %s1158_s25, %s1158_s25, %s1159_s26  }
  0x13   :  { %s1160_s29 = smov [#allocation6]   ;;  %s1107_s7 = scalar_lea.hbm %s1275_s2, 16384 }
  0x14   :  { %s31_s30 = sshll.u32 %s1160_s29, 4  ;;  %p1108_p8 = scmp.ne.s32.totalorder %s1275_s2, %s1107_s7  ;;  %s32_s30 = int_to_ptr.vmem [resolvable:$true] %s31_s30 }
  0x15   :  { %p1111_p9 = scmp.lt.u32.totalorder %s1107_s7, %s1275_s2 }
  0x17   :  { %p1113_p10 = pnand %p1111_p9, %p1108_p8 }
  0x19   :  { %1116 = shalt.err (!%p1113_p10)
}
  0x1a   :  { %s1117_s12 = scalar_lea.vmem %s32_s30, 16384  ;;  %p1122_p12 = scmp.lt.s32.totalorder %s32_s30, %s32_s30 }
  0x1b   :  { %p1118_p11 = scmp.ne.s32.totalorder %s32_s30, %s1117_s12  ;;  %p1123_p13 = scmp.lt.s32.totalorder %s1117_s12, %s1117_s12 }
  0x1d   :  { %p1124_p0 = por %p1123_p13, %p1122_p12 }
  0x1f   :  { %p1125_p1 = pnand %p1124_p0, %p1118_p11 }
  0x21   :  { %1128 = shalt.err (!%p1125_p1)
}
  0x22   :  { %37 = dma.hbm_to_vmem [thread:$0]  %s1275_s2, 16384, %s32_s30, [#allocation7], %s1158_s25, %s1158_s25, %s1159_s26  }
  0x23   :  { %1151 = dma.done.wait [#allocation4], 2048  }
  0x24   :  { %1152 = vsyncadd [#allocation4], 4294965248 }
  0x25   :  { %1153 = dma.done.wait [#allocation7], 16384  }
  0x26   :  { %1154 = vsyncadd [#allocation7], 4294950912  ;;  %v1161_v0 = vmov 0   ;;  %v50_v1 = vld [vmem:[%s1273_s0 + $0x10] sm:$0xff]  ;;  %v48_v2 = vld [vmem:[%s1273_s0] sm:$0xff] }
  0x27   :  { %1080 = vset.pattern.permute.xlu1 %v1161_v0  ;;  %1079 = vset.pattern.permute.xlu0 %v1161_v0  ;;  %v51_v3 = vld [vmem:[%s1273_s0 + $0x18] sm:$0xff]  ;;  %v49_v4 = vld [vmem:[%s1273_s0 + $0x8] sm:$0xff]  ;;  %v104_v5 = vld [vmem:[#allocation3] sm:$0xff] }
  0x28   :  { %63 = vperm.xlu1 %1080, %v50_v1   ;;  %57 = vperm.xlu0 %1079, %v48_v2   ;;  %v105_v6 = vld [vmem:[#allocation3 + $0x8] sm:$0xff]  ;;  %v106_v7 = vld [vmem:[#allocation3 + $0x10] sm:$0xff]  ;;  %v107_v8 = vld [vmem:[#allocation3 + $0x18] sm:$0xff] }
  0x29   :  { %v912_v9 = vpack.c.bf16 %v105_v6, %v104_v5  ;;  %v916_v10 = vpack.c.bf16 %v107_v8, %v106_v7  ;;  %v108_v11 = vld [vmem:[#allocation3 + $0x20] sm:$0xff]  ;;  %v109_v12 = vld [vmem:[#allocation3 + $0x28] sm:$0xff]  ;;  %v110_v16 = vld [vmem:[#allocation3 + $0x30] sm:$0xff] }
  0x2a   :  { %v53_v13 = vld [vmem:[%s1273_s0 + $0x28] sm:$0xff]  ;;  %v52_v14 = vld [vmem:[%s1273_s0 + $0x20] sm:$0xff]  ;;  %v920_v15 = vpack.c.bf16 %v109_v12, %v108_v11  ;;  %v111_v17 = vld [vmem:[#allocation3 + $0x38] sm:$0xff] }
  0x2b   :  { %913 = vmatprep.subr.bf16.mxu0 %v912_v9  ;;  %v55_v18 = vld [vmem:[%s1273_s0 + $0x38] sm:$0xff]  ;;  %v54_v19 = vld [vmem:[%s1273_s0 + $0x30] sm:$0xff]  ;;  %v924_v20 = vpack.c.bf16 %v111_v17, %v110_v16  ;;  %v112_v21 = vld [vmem:[#allocation3 + $0x40] sm:$0xff] }
  0x2c   :  { %66 = vperm.xlu1 %1080, %v51_v3   ;;  %60 = vperm.xlu0 %1079, %v49_v4   ;;  %v113_v22 = vld [vmem:[#allocation3 + $0x48] sm:$0xff]  ;;  %v114_v24 = vld [vmem:[#allocation3 + $0x50] sm:$0xff]  ;;  %v115_v25 = vld [vmem:[#allocation3 + $0x58] sm:$0xff] }
  0x2d   :  { %915 = vmatpush3.bf16.msra.mxu0 %v912_v9  ;;  %v928_v23 = vpack.c.bf16 %v113_v22, %v112_v21  ;;  %v257_v26 = vld [vmem:[#allocation6 + $0x80] sm:$0xff]  ;;  %v258_v27 = vld [vmem:[#allocation6 + $0x88] sm:$0xff]  ;;  %v259_v31 = vld [vmem:[#allocation6 + $0x90] sm:$0xff]  ;;  %v932_v33 = vpack.c.bf16 %v115_v25, %v114_v24 }
  0x2e   :  { %917 = vmatprep.subr.bf16.mxu0 %v916_v10  ;;  %v241_v28 = vld [vmem:[#allocation6] sm:$0xff]  ;;  %v944_v29 = vpack.c.bf16 %v258_v27, %v257_v26  ;;  %v242_v30 = vld [vmem:[#allocation6 + $0x8] sm:$0xff]  ;;  %v260_v32 = vld [vmem:[#allocation6 + $0x98] sm:$0xff] }
  0x2f   :  { %v946_v34 = vpack.c.bf16 %v242_v30, %v241_v28  ;;  %v948_v35 = vpack.c.bf16 %v260_v32, %v259_v31  ;;  %v243_v36 = vld [vmem:[#allocation6 + $0x10] sm:$0xff]  ;;  %v116_v37 = vld [vmem:[#allocation3 + $0x60] sm:$0xff]  ;;  %v117_v38 = vld [vmem:[#allocation3 + $0x68] sm:$0xff]  ;;  %v1162_v28 = vmov 1.0  }
  0x30   :  { %72 = vperm.xlu1 %1080, %v53_v13   ;;  %69 = vperm.xlu0 %1079, %v52_v14   ;;  %v244_v39 = vld [vmem:[#allocation6 + $0x18] sm:$0xff]  ;;  %v261_v41 = vld [vmem:[#allocation6 + $0xa0] sm:$0xff]  ;;  %v262_v42 = vld [vmem:[#allocation6 + $0xa8] sm:$0xff]  ;;  %v936_v46 = vpack.c.bf16 %v117_v38, %v116_v37 }
  0x31   :  { %919 = vmatpush3.bf16.msra.mxu0 %v916_v10  ;;  %945 = vmatprep.subr.bf16.mxu1 %v944_v29  ;;  %v950_v40 = vpack.c.bf16 %v244_v39, %v243_v36  ;;  %v952_v43 = vpack.c.bf16 %v262_v42, %v261_v41  ;;  %v245_v44 = vld [vmem:[#allocation6 + $0x20] sm:$0xff]  ;;  %v246_v45 = vld [vmem:[#allocation6 + $0x28] sm:$0xff]  ;;  %v263_v47 = vld [vmem:[#allocation6 + $0xb0] sm:$0xff] }
  0x32   :  { %921 = vmatprep.subr.bf16.mxu0 %v920_v15  ;;  %947 = vmatpush3.bf16.msra.mxu1 %v946_v34  ;;  %v118_v48 = vld [vmem:[#allocation3 + $0x70] sm:$0xff]  ;;  %v119_v49 = vld [vmem:[#allocation3 + $0x78] sm:$0xff]  ;;  %v954_v51 = vpack.c.bf16 %v246_v45, %v245_v44  ;;  %v265_v56 = vld [vmem:[#allocation6 + $0xc0] sm:$0xff] }
  0x33   :  { %949 = vmatprep.subr.bf16.mxu1 %v948_v35  ;;  %v264_v50 = vld [vmem:[#allocation6 + $0xb8] sm:$0xff]  ;;  %v247_v53 = vld [vmem:[#allocation6 + $0x30] sm:$0xff]  ;;  %v940_v55 = vpack.c.bf16 %v119_v49, %v118_v48  ;;  %v266_v57 = vld [vmem:[#allocation6 + $0xc8] sm:$0xff] }
  0x34   :  { %78 = vperm.xlu1 %1080, %v55_v18   ;;  %75 = vperm.xlu0 %1079, %v54_v19   ;;  %v956_v52 = vpack.c.bf16 %v264_v50, %v263_v47  ;;  %v248_v54 = vld [vmem:[#allocation6 + $0x38] sm:$0xff]  ;;  %v289_v58 = vld [vmem:[#allocation6 + $0x180] sm:$0xff]  ;;  %v290_v59 = vld [vmem:[#allocation6 + $0x188] sm:$0xff]  ;;  %v960_v61 = vpack.c.bf16 %v266_v57, %v265_v56 }
  0x35   :  { %923 = vmatpush3.bf16.msra.mxu0 %v920_v15  ;;  %v958_v60 = vpack.c.bf16 %v248_v54, %v247_v53  ;;  %v249_v62 = vld [vmem:[#allocation6 + $0x40] sm:$0xff]  ;;  %v250_v63 = vld [vmem:[#allocation6 + $0x48] sm:$0xff]  ;;  %v976_v0 = vpack.c.bf16 %v290_v59, %v289_v58  ;;  %v267_v1 = vld [vmem:[#allocation6 + $0xd0] sm:$0xff] }
  0x36   :  { %925 = vmatprep.subr.bf16.mxu0 %v924_v20  ;;  %951 = vmatpush3.bf16.msra.mxu1 %v950_v40  ;;  %v268_v2 = vld [vmem:[#allocation6 + $0xd8] sm:$0xff]  ;;  %v962_v3 = vpack.c.bf16 %v250_v63, %v249_v62  ;;  %v251_v5 = vld [vmem:[#allocation6 + $0x50] sm:$0xff]  ;;  %v269_v7 = vld [vmem:[#allocation6 + $0xe0] sm:$0xff] }
  0x37   :  { %953 = vmatprep.subr.bf16.mxu1 %v952_v43  ;;  %v964_v4 = vpack.c.bf16 %v268_v2, %v267_v1  ;;  %v252_v6 = vld [vmem:[#allocation6 + $0x58] sm:$0xff]  ;;  %v270_v8 = vld [vmem:[#allocation6 + $0xe8] sm:$0xff]  ;;  %v253_v11 = vld [vmem:[#allocation6 + $0x60] sm:$0xff] }
  0x38   :  { %v966_v9 = vpack.c.bf16 %v252_v6, %v251_v5  ;;  %v968_v10 = vpack.c.bf16 %v270_v8, %v269_v7  ;;  %v254_v12 = vld [vmem:[#allocation6 + $0x68] sm:$0xff]  ;;  %v271_v13 = vld [vmem:[#allocation6 + $0xf0] sm:$0xff]  ;;  %v272_v14 = vld [vmem:[#allocation6 + $0xf8] sm:$0xff] }
  0x39   :  { %927 = vmatpush3.bf16.msra.mxu0 %v924_v20  ;;  %v970_v15 = vpack.c.bf16 %v254_v12, %v253_v11  ;;  %v972_v16 = vpack.c.bf16 %v272_v14, %v271_v13  ;;  %v255_v17 = vld [vmem:[#allocation6 + $0x70] sm:$0xff]  ;;  %v256_v18 = vld [vmem:[#allocation6 + $0x78] sm:$0xff]  ;;  %v46_v20 = vlaneseq  ;;  %v273_v24 = vld [vmem:[#allocation6 + $0x100] sm:$0xff] }
  0x3a   :  { %929 = vmatprep.subr.bf16.mxu0 %v928_v23  ;;  %955 = vmatpush3.bf16.msra.mxu1 %v954_v51  ;;  %v974_v19 = vpack.c.bf16 %v256_v18, %v255_v17  ;;  %v274_v25 = vld [vmem:[#allocation6 + $0x108] sm:$0xff]  ;;  %v291_v26 = vld [vmem:[#allocation6 + $0x190] sm:$0xff]  ;;  %v292_v27 = vld [vmem:[#allocation6 + $0x198] sm:$0xff] }
  0x3b   :  { %957 = vmatprep.subr.bf16.mxu1 %v956_v52  ;;  %v1237_v21 = vand.u32 127, %v46_v20  ;;  %v978_v29 = vpack.c.bf16 %v274_v25, %v273_v24  ;;  %v980_v32 = vpack.c.bf16 %v292_v27, %v291_v26  ;;  %v276_v34 = vld [vmem:[#allocation6 + $0x118] sm:$0xff]  ;;  %v293_v35 = vld [vmem:[#allocation6 + $0x1a0] sm:$0xff]  ;;  %v294_v36 = vld [vmem:[#allocation6 + $0x1a8] sm:$0xff] }
  0x3c   :  { %v984_v40 = vpack.c.bf16 %v294_v36, %v293_v35  ;;  %v277_v41 = vld [vmem:[#allocation6 + $0x120] sm:$0xff]  ;;  %v278_v42 = vld [vmem:[#allocation6 + $0x128] sm:$0xff]  ;;  %v295_v43 = vld [vmem:[#allocation6 + $0x1b0] sm:$0xff] }
  0x3d   :  { %931 = vmatpush3.bf16.msra.mxu0 %v928_v23  ;;  %v296_v44 = vld [vmem:[#allocation6 + $0x1b8] sm:$0xff]  ;;  %v986_v45 = vpack.c.bf16 %v278_v42, %v277_v41  ;;  %v279_v48 = vld [vmem:[#allocation6 + $0x130] sm:$0xff]  ;;  %v297_v50 = vld [vmem:[#allocation6 + $0x1c0] sm:$0xff]  ;;  %vm656_vm8 = vcmp.lt.s32.totalorder %v1237_v21, 2 }
  0x3e   :  { %933 = vmatprep.subr.bf16.mxu0 %v932_v33  ;;  %959 = vmatpush3.bf16.msra.mxu1 %v958_v60  ;;  %v988_v47 = vpack.c.bf16 %v296_v44, %v295_v43  ;;  %v280_v49 = vld [vmem:[#allocation6 + $0x138] sm:$0xff]  ;;  %v298_v51 = vld [vmem:[#allocation6 + $0x1c8] sm:$0xff]  ;;  %v299_v57 = vld [vmem:[#allocation6 + $0x1d0] sm:$0xff] }
  0x3f   :  { %961 = vmatprep.subr.bf16.mxu1 %v960_v61  ;;  %v990_v53 = vpack.c.bf16 %v280_v49, %v279_v48  ;;  %v992_v54 = vpack.c.bf16 %v298_v51, %v297_v50  ;;  %v282_v56 = vld [vmem:[#allocation6 + $0x148] sm:$0xff]  ;;  %v300_v58 = vld [vmem:[#allocation6 + $0x1d8] sm:$0xff]  ;;  %v283_v61 = vld [vmem:[#allocation6 + $0x150] sm:$0xff] }
  0x40   :  { %v996_v60 = vpack.c.bf16 %v300_v58, %v299_v57  ;;  %v284_v62 = vld [vmem:[#allocation6 + $0x158] sm:$0xff]  ;;  %v301_v63 = vld [vmem:[#allocation6 + $0x1e0] sm:$0xff]  ;;  %v303_v6 = vld [vmem:[#allocation6 + $0x1f0] sm:$0xff] }
  0x41   :  { %935 = vmatpush3.bf16.msra.mxu0 %v932_v33  ;;  %v275_v33 = vld [vmem:[#allocation6 + $0x110] sm:$0xff]  ;;  %v998_v1 = vpack.c.bf16 %v284_v62, %v283_v61  ;;  %v304_v7 = vld [vmem:[#allocation6 + $0x1f8] sm:$0xff]  ;;  %v321_v8 = vld [vmem:[#allocation6 + $0x280] sm:$0xff] }
  0x42   :  { %937 = vmatprep.subr.bf16.mxu0 %v936_v46  ;;  %963 = vmatpush3.bf16.msra.mxu1 %v962_v3  ;;  %v982_v37 = vpack.c.bf16 %v276_v34, %v275_v33  ;;  %v285_v3 = vld [vmem:[#allocation6 + $0x160] sm:$0xff]  ;;  %v287_v11 = vld [vmem:[#allocation6 + $0x170] sm:$0xff]  ;;  %v288_v12 = vld [vmem:[#allocation6 + $0x178] sm:$0xff] }
  0x43   :  { %965 = vmatprep.subr.bf16.mxu1 %v964_v4  ;;  %v286_v4 = vld [vmem:[#allocation6 + $0x168] sm:$0xff]  ;;  %v1006_v14 = vpack.c.bf16 %v288_v12, %v287_v11  ;;  %v305_v18 = vld [vmem:[#allocation6 + $0x200] sm:$0xff]  ;;  %v323_v20 = vld [vmem:[#allocation6 + $0x290] sm:$0xff] }
  0x44   :  { %v1002_v5 = vpack.c.bf16 %v286_v4, %v285_v3  ;;  %v307_v24 = vld [vmem:[#allocation6 + $0x210] sm:$0xff]  ;;  %v308_v25 = vld [vmem:[#allocation6 + $0x218] sm:$0xff]  ;;  %v358_v48 = vld [vmem:[#allocation6 + $0x3a8] sm:$0xff] }
  0x45   :  { %939 = vmatpush3.bf16.msra.mxu0 %v936_v46  ;;  %v355_v33 = vld [vmem:[#allocation6 + $0x390] sm:$0xff]  ;;  %v356_v34 = vld [vmem:[#allocation6 + $0x398] sm:$0xff]  ;;  %v1014_v35 = vpack.c.bf16 %v308_v25, %v307_v24  ;;  %v342_v57 = vld [vmem:[#allocation6 + $0x328] sm:$0xff] }
  0x46   :  { %941 = vmatprep.subr.bf16.mxu0 %v940_v55  ;;  %967 = vmatpush3.bf16.msra.mxu1 %v966_v9  ;;  %v1004_v9 = vpack.c.bf16 %v304_v7, %v303_v6  ;;  %v1044_v41 = vpack.c.bf16 %v356_v34, %v355_v33  ;;  %v339_v42 = vld [vmem:[#allocation6 + $0x310] sm:$0xff]  ;;  %v340_v43 = vld [vmem:[#allocation6 + $0x318] sm:$0xff]  ;;  %v329_v58 = vld [vmem:[#allocation6 + $0x2c0] sm:$0xff] }
  0x47   :  { %969 = vmatprep.subr.bf16.mxu1 %v968_v10  ;;  %v322_v10 = vld [vmem:[#allocation6 + $0x288] sm:$0xff]  ;;  %v327_v44 = vld [vmem:[#allocation6 + $0x2b0] sm:$0xff]  ;;  %v1046_v50 = vpack.c.bf16 %v340_v43, %v339_v42  ;;  %v360_v62 = vld [vmem:[#allocation6 + $0x3b8] sm:$0xff] }
  0x48   :  { %v1008_v13 = vpack.c.bf16 %v322_v10, %v321_v8  ;;  %v311_v51 = vld [vmem:[#allocation6 + $0x230] sm:$0xff]  ;;  %v344_v7 = vld [vmem:[#allocation6 + $0x338] sm:$0xff]  ;;  %v361_v11 = vld [vmem:[#allocation6 + $0x3c0] sm:$0xff] }
  0x49   :  { %943 = vmatpush3.bf16.msra.mxu0 %v940_v55  ;;  %v281_v55 = vld [vmem:[#allocation6 + $0x140] sm:$0xff]  ;;  %v359_v61 = vld [vmem:[#allocation6 + $0x3b0] sm:$0xff]  ;;  %v332_v10 = vld [vmem:[#allocation6 + $0x2d8] sm:$0xff] }
  0x4a   :  { %977 = vmatprep.subr.bf16.mxu0 %v976_v0  ;;  %971 = vmatpush3.bf16.msra.mxu1 %v970_v15  ;;  %v994_v59 = vpack.c.bf16 %v282_v56, %v281_v55  ;;  %v302_v0 = vld [vmem:[#allocation6 + $0x1e8] sm:$0xff]  ;;  %v353_v15 = vld [vmem:[#allocation6 + $0x380] sm:$0xff]  ;;  %v343_v6 = vld [vmem:[#allocation6 + $0x330] sm:$0xff] }
  0x4b   :  { %973 = vmatprep.subr.bf16.mxu1 %v972_v16  ;;  %v1000_v2 = vpack.c.bf16 %v302_v0, %v301_v63  ;;  %v354_v16 = vld [vmem:[#allocation6 + $0x388] sm:$0xff]  ;;  %v341_v56 = vld [vmem:[#allocation6 + $0x320] sm:$0xff]  ;;  %v331_v8 = vld [vmem:[#allocation6 + $0x2d0] sm:$0xff] }
  0x4c   :  { %v1040_v17 = vpack.c.bf16 %v354_v16, %v353_v15  ;;  %v1050_v0 = vpack.c.bf16 %v342_v57, %v341_v56  ;;  %v362_v12 = vld [vmem:[#allocation6 + $0x3c8] sm:$0xff]  ;;  %v315_v15 = vld [vmem:[#allocation6 + $0x250] sm:$0xff]  ;;  %v316_v16 = vld [vmem:[#allocation6 + $0x258] sm:$0xff] }
  0x4d   :  { %v363_v24 = vld [vmem:[#allocation6 + $0x3d0] sm:$0xff]  ;;  %v364_v25 = vld [vmem:[#allocation6 + $0x3d8] sm:$0xff]  ;;  %v703_v57 = vld [vmem:[%s1276_s3] ss:$0 sm:$0xff]  ;;  %s1163_s3 = smov [#allocation8]  }
  0x4e   :  { %975 = vmatpush3.bf16.msra.mxu1 %v974_v19  ;;  %v306_v19 = vld [vmem:[#allocation6 + $0x208] sm:$0xff]  ;;  %v348_v33 = vld [vmem:[#allocation6 + $0x358] sm:$0xff]  ;;  %v335_v34 = vld [vmem:[#allocation6 + $0x2f0] sm:$0xff]  ;;  %s677_s30 = sshll.u32 %s1163_s3, 4  ;;  %s678_s30 = int_to_ptr.vmem [resolvable:$true] %s677_s30 }
  0x4f   :  { %1009 = vmatprep.subr.bf16.mxu1 %v1008_v13  ;;  %v320_v43 = vld [vmem:[#allocation6 + $0x278] sm:$0xff]  ;;  %s1129_s5 = scalar_lea.vmem %s678_s30, 128  ;;  %p1134_p3 = scmp.lt.s32.totalorder %s678_s30, %s678_s30 }
  0x50   :  { %p1130_p2 = scmp.ne.s32.totalorder %s678_s30, %s1129_s5  ;;  %p1135_p4 = scmp.lt.s32.totalorder %s1129_s5, %s1129_s5 }
  0x52   :  { %p1136_p5 = por %p1135_p4, %p1134_p3 }
  0x54   :  { %p1137_p6 = pnand %p1136_p5, %p1130_p2 }
  0xa7   :  { %v64_v22 = vpop.permute.xlu1 %63  ;;  %v58_v23 = vpop.permute.xlu0 %57 }
  0xa8   :  { %vm80_vm0 = vcmp.eq.s32.totalorder %v58_v23, %v1237_v21  ;;  %vm82_vm1 = vcmp.eq.s32.totalorder %v64_v22, %v1237_v21  ;;  %v324_v22 = vld [vmem:[#allocation6 + $0x298] sm:$0xff]  ;;  %v1010_v23 = vpack.c.bf16 %v306_v19, %v305_v18  ;;  %v1056_v18 = vpack.c.bf16 %v362_v12, %v361_v11  ;;  %v345_v19 = vld [vmem:[#allocation6 + $0x340] sm:$0xff] }
  0xa9   :  { %900 = vmatprep.mubr.msk.f32.mxu0 %vm80_vm0, %v1162_v28  ;;  %v1012_v27 = vpack.c.bf16 %v324_v22, %v323_v20  ;;  %v346_v20 = vld [vmem:[#allocation6 + $0x348] sm:$0xff]  ;;  %v333_v22 = vld [vmem:[#allocation6 + $0x2e0] sm:$0xff] }
  0xab   :  { %v67_v30 = vpop.permute.xlu1 %66  ;;  %v61_v31 = vpop.permute.xlu0 %60 }
  0xac   :  { %vm81_vm2 = vcmp.eq.s32.totalorder %v61_v31, %v1237_v21  ;;  %vm83_vm3 = vcmp.eq.s32.totalorder %v67_v30, %v1237_v21  ;;  %v325_v30 = vld [vmem:[#allocation6 + $0x2a0] sm:$0xff] }
  0xad   :  { %901 = vmatmul.mubr.msk.f32.vlgmr.msra.gmra.mrb[0].mxu0 %vm81_vm2, %v1162_v28 }
  0xae   :  { %903 = vmatprep.mubr.msk.f32.mxu0 %vm82_vm1, %v1162_v28  ;;  %979 = vmatpush3.bf16.msra.mxu0 %v978_v29  ;;  %v338_v29 = vld [vmem:[#allocation6 + $0x308] sm:$0xff] }
  0xaf   :  { %v73_v38 = vpop.permute.xlu1 %72  ;;  %v70_v39 = vpop.permute.xlu0 %69  ;;  %981 = vmatprep.subr.bf16.mxu0 %v980_v32  ;;  %v326_v32 = vld [vmem:[#allocation6 + $0x2a8] sm:$0xff] }
  0xb0   :  { %vm84_vm4 = vcmp.eq.s32.totalorder %v70_v39, %v1237_v21  ;;  %vm85_vm5 = vcmp.eq.s32.totalorder %v73_v38, %v1237_v21  ;;  %v310_v38 = vld [vmem:[#allocation6 + $0x228] sm:$0xff] }
  0xb1   :  { %904 = vmatmul.mubr.msk.f32.gmra.mrb[2].mxu0 %vm83_vm3, %v1162_v28 }
  0xb2   :  { %906 = vmatprep.mubr.msk.f32.mxu0 %vm84_vm4, %v1162_v28  ;;  %983 = vmatpush3.bf16.msra.mxu0 %v982_v37  ;;  %v309_v37 = vld [vmem:[#allocation6 + $0x220] sm:$0xff] }
  0xb3   :  { %v76_v46 = vpop.permute.xlu0 %75  ;;  %985 = vmatprep.subr.bf16.mxu0 %v984_v40  ;;  %v79_v52 = vpop.permute.xlu1 %78  ;;  %v1016_v40 = vpack.c.bf16 %v326_v32, %v325_v30  ;;  %v1018_v49 = vpack.c.bf16 %v310_v38, %v309_v37  ;;  %v347_v32 = vld [vmem:[#allocation6 + $0x350] sm:$0xff]  ;;  %v366_v37 = vld [vmem:[#allocation6 + $0x3e8] sm:$0xff] }
  0xb4   :  { %vm86_vm6 = vcmp.eq.s32.totalorder %v76_v46, %v1237_v21  ;;  %vm87_vm7 = vcmp.eq.s32.totalorder %v79_v52, %v1237_v21  ;;  %v328_v46 = vld [vmem:[#allocation6 + $0x2b8] sm:$0xff] }
  0xb5   :  { %907 = vmatmul.mubr.msk.f32.gmra.mrb[4].mxu0 %vm85_vm5, %v1162_v28  ;;  %v312_v52 = vld [vmem:[#allocation6 + $0x238] sm:$0xff] }
  0xb6   :  { %909 = vmatprep.mubr.msk.f32.mxu0 %vm86_vm6, %v1162_v28  ;;  %987 = vmatpush3.bf16.msra.mxu0 %v986_v45  ;;  %v1022_v63 = vpack.c.bf16 %v312_v52, %v311_v51  ;;  %v351_v51 = vld [vmem:[#allocation6 + $0x370] sm:$0xff]  ;;  %v352_v52 = vld [vmem:[#allocation6 + $0x378] sm:$0xff] }
  0xb7   :  { %989 = vmatprep.subr.bf16.mxu0 %v988_v47  ;;  %v357_v47 = vld [vmem:[#allocation6 + $0x3a0] sm:$0xff] }
  0xb8   :  { %v1048_v55 = vpack.c.bf16 %v358_v48, %v357_v47  ;;  %v368_v47 = vld [vmem:[#allocation6 + $0x3f8] sm:$0xff] }
  0xb9   :  { %910 = vmatmul.mubr.msk.f32.gmra.mrb[6].mxu0 %vm87_vm7, %v1162_v28  ;;  %v337_v28 = vld [vmem:[#allocation6 + $0x300] sm:$0xff] }
  0xba   :  { %991 = vmatpush3.bf16.msra.mxu0 %v990_v53  ;;  %v1042_v36 = vpack.c.bf16 %v338_v29, %v337_v28  ;;  %v317_v28 = vld [vmem:[#allocation6 + $0x260] sm:$0xff]  ;;  %v318_v29 = vld [vmem:[#allocation6 + $0x268] sm:$0xff] }
  0xbb   :  { %993 = vmatprep.subr.bf16.mxu0 %v992_v54  ;;  %v1020_v54 = vpack.c.bf16 %v328_v46, %v327_v44  ;;  %v1034_v38 = vpack.c.bf16 %v318_v29, %v317_v28  ;;  %v349_v44 = vld [vmem:[#allocation6 + $0x360] sm:$0xff]  ;;  %v367_v46 = vld [vmem:[#allocation6 + $0x3f0] sm:$0xff] }
  0xbe   :  { %995 = vmatpush3.bf16.msra.mxu0 %v994_v59 }
  0xbf   :  { %997 = vmatprep.subr.bf16.mxu0 %v996_v60  ;;  %v330_v60 = vld [vmem:[#allocation6 + $0x2c8] sm:$0xff] }
  0xc0   :  { %v1024_v4 = vpack.c.bf16 %v330_v60, %v329_v58 }
  0xc2   :  { %999 = vmatpush3.bf16.msra.mxu0 %v998_v1  ;;  %v313_v1 = vld [vmem:[#allocation6 + $0x240] sm:$0xff] }
  0xc3   :  { %1001 = vmatprep.subr.bf16.mxu0 %v1000_v2  ;;  %v314_v2 = vld [vmem:[#allocation6 + $0x248] sm:$0xff] }
  0xc4   :  { %v1026_v13 = vpack.c.bf16 %v314_v2, %v313_v1 }
  0xc6   :  { %1003 = vmatpush3.bf16.msra.mxu0 %v1002_v5  ;;  %v1052_v5 = vpack.c.bf16 %v360_v62, %v359_v61 }
  0xc7   :  { %1005 = vmatprep.subr.bf16.mxu0 %v1004_v9 }
  0xca   :  { %1007 = vmatpush3.bf16.msra.mxu0 %v1006_v14  ;;  %v1054_v14 = vpack.c.bf16 %v344_v7, %v343_v6 }
  0xcb   :  { %1041 = vmatprep.subr.bf16.mxu0 %v1040_v17  ;;  %v1028_v17 = vpack.c.bf16 %v332_v10, %v331_v8 }
 0x180   :  { %v902_v26 = vpop.f32.mrb[0].mxu0 }
 0x181   :  { %v186_v31 = vpop.f32.mrb[1].mxu0  ;;  %440 = vmatprep.mubr.f32.mxu1 %v902_v26  ;;  %v1030_v26 = vpack.c.bf16 %v316_v16, %v315_v15 }
 0x182   :  { %441 = vmatmul.mubr.f32.vlgmr.msra.gmra.mrb[0].mxu1 %v186_v31  ;;  %v1060_v31 = vpack.c.bf16 %v364_v25, %v363_v24 }
 0x183   :  { %1011 = vmatpush3.bf16.msra.mxu1 %v1010_v23  ;;  %v334_v23 = vld [vmem:[#allocation6 + $0x2e8] sm:$0xff] }
 0x184   :  { %v905_v39 = vpop.f32.mrb[2].mxu0  ;;  %1013 = vmatprep.subr.bf16.mxu1 %v1012_v27  ;;  %v1058_v27 = vpack.c.bf16 %v346_v20, %v345_v19  ;;  %v1032_v30 = vpack.c.bf16 %v334_v23, %v333_v22 }
 0x185   :  { %v196_v45 = vpop.f32.mrb[3].mxu0  ;;  %510 = vmatprep.mubr.f32.mxu0 %v905_v39  ;;  %v1062_v39 = vpack.c.bf16 %v348_v33, %v347_v32 }
 0x186   :  { %511 = vmatmul.mubr.f32.vlgmr.msra.gmra.mrb[8].mxu0 %v196_v45  ;;  %v350_v45 = vld [vmem:[#allocation6 + $0x368] sm:$0xff] }
 0x187   :  { %1015 = vmatpush3.bf16.msra.mxu1 %v1014_v35  ;;  %1043 = vmatpush3.bf16.msra.mxu0 %v1042_v36  ;;  %v336_v35 = vld [vmem:[#allocation6 + $0x2f8] sm:$0xff]  ;;  %v365_v36 = vld [vmem:[#allocation6 + $0x3e0] sm:$0xff] }
 0x188   :  { %v908_v53 = vpop.f32.mrb[4].mxu0  ;;  %1017 = vmatprep.subr.bf16.mxu1 %v1016_v40  ;;  %1045 = vmatprep.subr.bf16.mxu0 %v1044_v41  ;;  %v319_v40 = vld [vmem:[#allocation6 + $0x270] sm:$0xff]  ;;  %v1036_v41 = vpack.c.bf16 %v336_v35, %v335_v34  ;;  %v1064_v42 = vpack.c.bf16 %v366_v37, %v365_v36 }
 0x189   :  { %v1247_v59 = vpop.f32.mrb[5].mxu0  ;;  %580 = vmatprep.mubr.f32.mxu1 %v908_v53  ;;  %v1038_v48 = vpack.c.bf16 %v320_v43, %v319_v40  ;;  %v1070_v53 = vpack.c.bf16 %v352_v52, %v351_v51 }
 0x18b   :  { %1019 = vmatpush3.bf16.msra.mxu1 %v1018_v49  ;;  %1047 = vmatpush3.bf16.msra.mxu0 %v1046_v50  ;;  %v1066_v49 = vpack.c.bf16 %v350_v45, %v349_v44  ;;  %v1068_v50 = vpack.c.bf16 %v368_v47, %v367_v46 }
 0x18c   :  { %v911_v3 = vpop.f32.mrb[6].mxu0  ;;  %1021 = vmatprep.subr.bf16.mxu1 %v1020_v54  ;;  %1049 = vmatprep.subr.bf16.mxu0 %v1048_v55 }
 0x18d   :  { %v1249_v9 = vpop.f32.mrb[7].mxu0  ;;  %650 = vmatprep.mubr.f32.mxu0 %v911_v3 }
 0x18f   :  { %1023 = vmatpush3.bf16.msra.mxu1 %v1022_v63  ;;  %1051 = vmatpush3.bf16.msra.mxu0 %v1050_v0 }
 0x190   :  { %1025 = vmatprep.subr.bf16.mxu1 %v1024_v4  ;;  %1053 = vmatprep.subr.bf16.mxu0 %v1052_v5 }
 0x193   :  { %1027 = vmatpush3.bf16.msra.mxu1 %v1026_v13  ;;  %1055 = vmatpush3.bf16.msra.mxu0 %v1054_v14 }
 0x194   :  { %1029 = vmatprep.subr.bf16.mxu1 %v1028_v17  ;;  %1057 = vmatprep.subr.bf16.mxu0 %v1056_v18 }
 0x197   :  { %1031 = vmatpush3.bf16.msra.mxu1 %v1030_v26  ;;  %1059 = vmatpush3.bf16.msra.mxu0 %v1058_v27 }
 0x198   :  { %1033 = vmatprep.subr.bf16.mxu1 %v1032_v30  ;;  %1061 = vmatprep.subr.bf16.mxu0 %v1060_v31 }
 0x19b   :  { %1035 = vmatpush3.bf16.msra.mxu1 %v1034_v38  ;;  %1063 = vmatpush3.bf16.msra.mxu0 %v1062_v39 }
 0x19c   :  { %1037 = vmatprep.subr.bf16.mxu1 %v1036_v41  ;;  %1065 = vmatprep.subr.bf16.mxu0 %v1064_v42 }
 0x19f   :  { %1039 = vmatpush3.bf16.msra.mxu1 %v1038_v48  ;;  %1067 = vmatpush3.bf16.msra.mxu0 %v1066_v49 }
 0x1a0   :  { %1069 = vmatprep.subr.bf16.mxu0 %v1068_v50 }
 0x1a2   :  { %581 = vmatmul.mubr.f32.vlgmr.msra.gmra.mrb[2].mxu1 %v1247_v59 }
 0x1a3   :  { %1071 = vmatpush3.bf16.msra.mxu0 %v1070_v53 }
 0x1a6   :  { %651 = vmatmul.mubr.f32.vlgmr.msra.gmra.mrb[10].mxu0 %v1249_v9 }
 0x255   :  { %v760_v54 = vpop.f32.mrb[0].mxu1 }
 0x256   :  { %v761_v55 = vpop.f32.mrb[1].mxu1 }
 0x257   :  { %v762_v56 = vadd.f32 %v761_v55, %v760_v54 }
 0x259   :  { %v795_v58 = vpop.f32.mrb[8].mxu0  ;;  %v443_v61 = vadd.f32 %v762_v56, %v703_v57 }
 0x25a   :  { %v796_v60 = vpop.f32.mrb[9].mxu0 }
 0x25b   :  { %v797_v62 = vadd.f32 %v796_v60, %v795_v58 }
 0x25d   :  { %v513_v63 = vadd.f32 %v797_v62, %v443_v61 }
 0x275   :  { %v830_v0 = vpop.f32.mrb[2].mxu1 }
 0x276   :  { %v831_v1 = vpop.f32.mrb[3].mxu1 }
 0x277   :  { %v832_v2 = vadd.f32 %v831_v1, %v830_v0 }
 0x279   :  { %v583_v3 = vadd.f32 %v832_v2, %v513_v63  ;;  %v865_v59 = vpop.f32.mrb[10].mxu0 }
 0x27a   :  { %v866_v4 = vpop.f32.mrb[11].mxu0 }
 0x27b   :  { %v867_v5 = vadd.f32 %v866_v4, %v865_v59 }
 0x27d   :  { %v653_v6 = vadd.f32 %v867_v5, %v583_v3 }
 0x27f   :  { %v657_v7 = vsel %vm656_vm8, %v653_v6, -1e+30 }
 0x280   :  { %658 = vmax.xlane.f32.xlu0 %v657_v7 }
 0x30d   :  { %v659_v8 = vpop.xlane.xlu0 %658 }
 0x30e   :  { %v660_v9 = vsub.f32 %v657_v7, %v659_v8 }
 0x310   :  { %v661_v10 = vmul.f32 1.442695, %v660_v9 }
 0x312   :  { %1081 = vpow2.f32 %v661_v10 }
 0x31c   :  { %v1082_v11 = vpop.eup %1081 }
 0x31d   :  { %663 = vadd.xlane.f32.xlu1 %v1082_v11 }
 0x3aa   :  { %v664_v12 = vpop.xlane.xlu1 %663 }
 0x3ab   :  { %1083 = vlog2.f32 %v664_v12 }
 0x3b5   :  { %v1084_v13 = vpop.eup %1083 }
 0x3b6   :  { %v666_v14 = vmul.f32 0.6931472, %v1084_v13 }
 0x3b8   :  { %v667_v15 = vadd.f32 %v666_v14, %v659_v8 }
 0x3ba   :  { %v668_v16 = vsub.f32 %v657_v7, %v667_v15 }
 0x3bc   :  { %v669_v17 = vsel %vm656_vm8, %v668_v16, 0.0 }
 0x3bd   :  { %670 = vst [vmem:[#allocation8] sm:$0xff] %v669_v17 }
 0x3be   :  { %1140 = shalt.err (!%p1137_p6)
}
 0x3bf   :  { %s1141_s8 = scalar_lea.hbm %s1277_s4, 128 }
 0x3c0   :  { %p1142_p7 = scmp.ne.s32.totalorder %s1277_s4, %s1141_s8  ;;  %p1145_p8 = scmp.lt.u32.totalorder %s1141_s8, %s1277_s4 }
 0x3c2   :  { %p1147_p9 = pnand %p1145_p8, %p1142_p7 }
 0x3c4   :  { %1150 = shalt.err (!%p1147_p9)
}
 0x3c5   :  { %680 = dma.vmem_to_hbm [thread:$0]  %s678_s30, 128, %s1277_s4, [#allocation5]  }
 0x3c6   :  { %1155 = dma.done.wait [#allocation5], 128  }
 0x3c7   :  { %1156 = vsyncadd [#allocation5], 4294967168 }
 0x3c8   :  { %684 = vsyncpa [#allocation4], 1 }
 0x3c9   :  { %685 = vsyncpa [#allocation7], 1 }
 0x3ca   :  { %686 = vsyncpa [#allocation5], 1 }

</bundles_post_ra>
